<compile_context>
chip_gen: v7x
topology: tpu7x:2x2x1
jax: 0.10.0
libtpu: 0.0.40
codegen_flags: <defaults>
</compile_context>

<pallas_src>
import functools
import math

import jax
import jax.numpy as jnp
from jax.experimental import pallas as pl
from jax.experimental.pallas import tpu as pltpu


# ---------------------------------------------------------------------------
# Pallas kernels: one [TN, TM] tile of K[b,n,m] = exp(-||z_m - mu_bn||^2/(2 sigma_bn^2))
# ---------------------------------------------------------------------------
def _rbf_tile_kernel(zt_ref, mu_ref, neg_inv_ref, out_ref, *, pos_dim):
    """VPU distance math; per-token scale -1/(2 sigma^2) precomputed outside."""
    zt = zt_ref[...]                              # [P, TM]  grid positions (M lane-dense)
    mu = mu_ref[...]                              # [TN, P]  token positions
    diff = zt[0:1, :] - mu[:, 0:1]                # [TN, TM]
    d2 = diff * diff
    for p in range(1, pos_dim):                   # P is tiny (1-3): static unroll
        diff = zt[p:p + 1, :] - mu[:, p:p + 1]
        d2 = d2 + diff * diff
    # f32 compute, single transcendental per element, cast only at the store.
    out_ref[...] = jnp.exp(d2 * neg_inv_ref[...]).astype(out_ref.dtype)


def _rbf_tile_kernel_mxu(zaug_ref, muaug_ref, bias_ref, out_ref):
    """MXU cross-term offload: exp(mu_aug @ z_aug + bias)."""
    d = jnp.dot(muaug_ref[...], zaug_ref[...],    # [TN,K]@[K,TM] -> [TN,TM]
                preferred_element_type=jnp.float32)
    out_ref[...] = jnp.exp(d + bias_ref[...]).astype(out_ref.dtype)


# ---------------------------------------------------------------------------
# Tiling helpers
# ---------------------------------------------------------------------------
def _round_up(x, m):
    return ((x + m - 1) // m) * m


def _pick_tile(dim, align, cap):
    """Largest tile <= cap that divides `dim` and is a multiple of `align`.
    `dim` must already be a multiple of `align` (caller pads first)."""
    if dim <= cap:
        return dim
    t = cap - (cap % align)
    while t >= align:
        if dim % t == 0:
            return t
        t -= align
    return align


# ---------------------------------------------------------------------------
# Wrapper: KernelBasis.compute_influence_matrix with a Gaussian/RBF phi
# ---------------------------------------------------------------------------
def rbf_influence(z, mu, sigma, *, tn=None, tm=None,
                  out_dtype=jnp.bfloat16, use_mxu=False):
    """Pallas implementation of KernelBasis.compute_influence_matrix (RBF phi).

    z:     [M, P], [1, M, P] or [B, M, P]
    mu:    [B, N, P]
    sigma: [B, N, 1]
    returns [B, N, M] in `out_dtype` (bf16 by default: kernel is HBM-write bound).
    """
    if z.ndim == 2:
        z = z[None]
    B, N, P = mu.shape
    Bz, M, Pz = z.shape
    if Pz != P:
        raise ValueError(f"z pos_dim {Pz} != mu pos_dim {P}")
    if Bz not in (1, B):
        raise ValueError(f"z batch dim {Bz} must be 1 or B={B}")
    if sigma.shape != (B, N, 1):
        sigma = sigma.reshape(B, N, 1)

    # --- tile selection + padding (lane-dense stores: tm % 128 == 0, tn % 8 == 0)
    if tn is not None:
        assert tn % 8 == 0, "tn must be a multiple of 8"
        n_pad = _round_up(N, tn)
    else:
        n_pad = _round_up(N, 8)
        tn = _pick_tile(n_pad, 8, 512)
    if tm is not None:
        assert tm % 128 == 0, "tm must be a multiple of 128"
        m_pad = _round_up(M, tm)
    else:
        m_pad = _round_up(M, 128)
        tm = _pick_tile(m_pad, 128, 4096)

    zf = z.astype(jnp.float32)
    muf = mu.astype(jnp.float32)
    # Per-token scale computed once outside the kernel (no N*M EUP divides).
    neg_inv = -0.5 / (sigma.astype(jnp.float32) ** 2)                  # [B, N, 1]

    if m_pad != M:
        zf = jnp.pad(zf, ((0, 0), (0, m_pad - M), (0, 0)))
    if n_pad != N:
        muf = jnp.pad(muf, ((0, 0), (0, n_pad - N), (0, 0)))
        neg_inv = jnp.pad(neg_inv, ((0, 0), (0, n_pad - N), (0, 0)))   # exp(0)=1, sliced off

    # z transposed to [Bz, P, m_pad] so M stays on the lane axis; never broadcast over B.
    z_t = jnp.transpose(zf, (0, 2, 1))

    if use_mxu:
        # Expanded distance: s*||z-mu||^2 = [-2*s*mu, s] . [z ; ||z||^2] + s*||mu||^2.
        # Pad the tiny contraction dim to a full sublane (8) for friendly MXU layout.
        kdim = max(8, P + 1)
        z_aug = jnp.concatenate(
            [z_t, jnp.sum(z_t * z_t, axis=1, keepdims=True)], axis=1)   # [Bz, P+1, m_pad]
        mu_aug = jnp.concatenate([-2.0 * neg_inv * muf, neg_inv], -1)   # [B, n_pad, P+1]
        if kdim > P + 1:
            z_aug = jnp.pad(z_aug, ((0, 0), (0, kdim - (P + 1)), (0, 0)))
            mu_aug = jnp.pad(mu_aug, ((0, 0), (0, 0), (0, kdim - (P + 1))))
        per_tok = neg_inv * jnp.sum(muf * muf, axis=-1, keepdims=True)  # bias [B, n_pad, 1]
        kernel = _rbf_tile_kernel_mxu
        z_arr, mu_arr = z_aug, mu_aug
    else:
        kdim = P
        kernel = functools.partial(_rbf_tile_kernel, pos_dim=P)
        z_arr, mu_arr, per_tok = z_t, muf, neg_inv

    z_index = (lambda n, b, m: (b, 0, m)) if (Bz == B and B > 1) else (lambda n, b, m: (0, 0, m))

    # Grid: largest parallel axis first so v7x megacore sharding engages even when B==1;
    # M innermost keeps the mu / per-token tiles resident across the lane sweep.
    grid = (n_pad // tn, B, m_pad // tm)

    # VMEM budget from the actual double-buffered tiles + headroom, clamped for v7x.
    out_itemsize = jnp.dtype(out_dtype).itemsize
    tile_bytes = tn * tm * out_itemsize + 4 * (kdim * tm + tn * kdim + tn)
    vmem_limit = int(max(16 << 20, min(2 * tile_bytes + (4 << 20), 40 << 20)))

    cost = pl.CostEstimate(
        flops=(3 * P + 2) * B * n_pad * m_pad,
        transcendentals=B * n_pad * m_pad,
        bytes_accessed=(out_itemsize * B * n_pad * m_pad
                        + 4 * (B * n_pad * kdim + B * n_pad + Bz * m_pad * kdim)),
    )

    out = pl.pallas_call(
        kernel,
        out_shape=jax.ShapeDtypeStruct((B, n_pad, m_pad), out_dtype),
        grid_spec=pltpu.PrefetchScalarGridSpec(
            num_scalar_prefetch=0,
            grid=grid,
            in_specs=[
                pl.BlockSpec((None, kdim, tm), z_index),                    # z-like tile
                pl.BlockSpec((None, tn, kdim), lambda n, b, m: (b, n, 0)),  # mu-like tile
                pl.BlockSpec((None, tn, 1), lambda n, b, m: (b, n, 0)),     # per-token scale/bias
            ],
            out_specs=pl.BlockSpec((None, tn, tm), lambda n, b, m: (b, n, m)),
        ),
        compiler_params=pltpu.CompilerParams(
            dimension_semantics=("parallel", "parallel", "parallel"),
            vmem_limit_bytes=vmem_limit,
        ),
        cost_estimate=cost,
    )(z_arr, mu_arr, per_tok)

    if n_pad != N or m_pad != M:
        out = out[:, :N, :M]
    return out


def data_dependent_rbf_kernel(z, mu, embeddings, params, *, min_sigma=0.1, max_sigma=10.0,
                              tn=None, tm=None, out_dtype=jnp.bfloat16, use_mxu=False):
    """DataDependentRBFKernel.forward: sigma-predictor MLP (hoisted to a batched XLA
    matmul chain over all B*N tokens) followed by the Pallas RBF influence kernel."""
    w1, b1, w2, b2, w3, b3 = params
    e = embeddings.astype(jnp.float32)
    h = jax.nn.gelu(e @ w1 + b1, approximate=False)     # exact erf GELU (torch default)
    h = jax.nn.gelu(h @ w2 + b2, approximate=False)
    s = jax.nn.sigmoid(h @ w3 + b3)                     # [B, N, 1]
    sigma = min_sigma + (max_sigma - min_sigma) * s
    return rbf_influence(z, mu, sigma, tn=tn, tm=tm, out_dtype=out_dtype, use_mxu=use_mxu)


# ---------------------------------------------------------------------------
# Reference + test harness
# ---------------------------------------------------------------------------
def _init_linear(key, fan_in, fan_out):
    # torch.nn.Linear default init: U(-1/sqrt(fan_in), 1/sqrt(fan_in)).
    kw, kb = jax.random.split(key)
    bound = 1.0 / math.sqrt(fan_in)
    w = jax.random.uniform(kw, (fan_in, fan_out), jnp.float32, -bound, bound)
    b = jax.random.uniform(kb, (fan_out,), jnp.float32, -bound, bound)
    return w, b


def _ref_rbf(z, mu, sigma):
    if z.ndim == 2:
        z = z[None]
    d2 = jnp.sum((z[:, None, :, :] - mu[:, :, None, :]) ** 2, axis=-1)   # [B, N, M]
    return jnp.exp(-d2 / (2.0 * sigma ** 2))


def _ref_mlp_sigma(emb, params, min_sigma, max_sigma):
    w1, b1, w2, b2, w3, b3 = params
    h = jax.nn.gelu(emb @ w1 + b1, approximate=False)
    h = jax.nn.gelu(h @ w2 + b2, approximate=False)
    return min_sigma + (max_sigma - min_sigma) * jax.nn.sigmoid(h @ w3 + b3)


if __name__ == "__main__":
    B, N, M, P, E, H = 2, 16, 256, 2, 32, 32
    MIN_SIGMA, MAX_SIGMA = 0.1, 10.0

    key = jax.random.PRNGKey(0)
    kz, kmu, kemb, ksig, ksig2, k1, k2, k3 = jax.random.split(key, 8)

    z = jax.random.uniform(kz, (M, P), jnp.float32)           # [M, P] grid positions
    mu = jax.random.uniform(kmu, (B, N, P), jnp.float32)      # [B, N, P] token positions
    emb = jax.random.normal(kemb, (B, N, E), jnp.float32)     # [B, N, E] token embeddings

    w1, b1 = _init_linear(k1, E, H)
    w2, b2 = _init_linear(k2, H, H // 2)
    w3, b3 = _init_linear(k3, H // 2, 1)
    params = (w1, b1, w2, b2, w3, b3)

    # 1) Direct KernelBasis contract forward(z, mu, sigma), f32 output, with
    #    non-aligned N/M so the pad-to-(8,128) + slice path is exercised.
    Nr, Mr = 13, 200
    z_r, mu_r = z[:Mr], mu[:, :Nr]
    sig_r = jax.random.uniform(ksig, (B, Nr, 1), jnp.float32, 0.5, 2.0)
    out1 = jax.block_until_ready(rbf_influence(z_r, mu_r, sig_r, out_dtype=jnp.float32))
    ref1 = _ref_rbf(z_r, mu_r, sig_r)
    assert out1.shape == (B, Nr, Mr)
    assert jnp.allclose(out1, ref1, rtol=1e-5, atol=1e-5), "mismatch (f32 padded path)"

    # 2) Data-dependent sigma path, bf16 output (default), tiles forced small so
    #    the (N_tiles, B, M_tiles) = (2, 2, 2) grid is actually exercised.
    out2 = jax.block_until_ready(
        data_dependent_rbf_kernel(z, mu, emb, params,
                                  min_sigma=MIN_SIGMA, max_sigma=MAX_SIGMA,
                                  tn=8, tm=128))
    sigma2 = _ref_mlp_sigma(emb, params, MIN_SIGMA, MAX_SIGMA)
    ref2 = _ref_rbf(z, mu, sigma2)
    assert out2.shape == (B, N, M) and out2.dtype == jnp.bfloat16
    assert jnp.allclose(out2.astype(jnp.float32), ref2, rtol=2e-2, atol=1e-2), \
        "mismatch (bf16 MLP path)"

    # 3) MXU cross-term offload path (expanded distance form); looser tolerance
    #    is expected for this variant (documented in the perf review).
    sig3 = jax.random.uniform(ksig2, (B, N, 1), jnp.float32, 0.5, 2.0)
    out3 = jax.block_until_ready(
        rbf_influence(z, mu, sig3, tn=8, tm=128, out_dtype=jnp.float32, use_mxu=True))
    ref3 = _ref_rbf(z, mu, sig3)
    assert out3.shape == (B, N, M)
    assert jnp.allclose(out3, ref3, rtol=5e-2, atol=5e-2), "mismatch (MXU path)"

    print("KERNEL_OK")
</pallas_src>

<mosaic_0001>
module attributes {stable_mosaic.version = 11 : i64} {
  func.func @_rbf_tile_kernel(%arg0: i32, %arg1: i32, %arg2: i32, %arg3: memref<1x2x256xf32, #tpu.memory_space<vmem>>, %arg4: memref<1x16x2xf32, #tpu.memory_space<vmem>>, %arg5: memref<1x16x1xf32, #tpu.memory_space<vmem>>, %arg6: memref<1x16x256xf32, #tpu.memory_space<vmem>>) attributes {dimension_semantics = [#tpu.dimension_semantics<parallel>, #tpu.dimension_semantics<parallel>, #tpu.dimension_semantics<parallel>], iteration_bounds = array<i64: 1, 2, 1>, scalar_prefetch = 0 : i64, scratch_operands = 0 : i64, tpu.core_type = #tpu.core_type<tc>, window_params = [{transform_indices = @transform_0, window_bounds = array<i64: 1, 2, 256>}, {transform_indices = @transform_1, window_bounds = array<i64: 1, 16, 2>}, {transform_indices = @transform_2, window_bounds = array<i64: 1, 16, 1>}, {transform_indices = @transform_3, window_bounds = array<i64: 1, 16, 256>}]} {
    %c0 = arith.constant 0 : index
    %c0_0 = arith.constant 0 : index
    %c0_1 = arith.constant 0 : index
    %0 = vector.load %arg3[%c0, %c0_0, %c0_1] : memref<1x2x256xf32, #tpu.memory_space<vmem>>, vector<1x2x256xf32>
    %1 = vector.shape_cast %0 : vector<1x2x256xf32> to vector<2x256xf32>
    %c0_2 = arith.constant 0 : index
    %c0_3 = arith.constant 0 : index
    %c0_4 = arith.constant 0 : index
    %2 = vector.load %arg4[%c0_2, %c0_3, %c0_4] : memref<1x16x2xf32, #tpu.memory_space<vmem>>, vector<1x16x2xf32>
    %3 = vector.shape_cast %2 : vector<1x16x2xf32> to vector<16x2xf32>
    %4 = vector.extract_strided_slice %1 {offsets = [0, 0], sizes = [1, 256], strides = [1, 1]} : vector<2x256xf32> to vector<1x256xf32>
    %5 = vector.extract_strided_slice %3 {offsets = [0, 0], sizes = [16, 1], strides = [1, 1]} : vector<16x2xf32> to vector<16x1xf32>
    %6 = vector.broadcast %4 : vector<1x256xf32> to vector<16x256xf32>
    %7 = vector.broadcast %5 : vector<16x1xf32> to vector<16x256xf32>
    %8 = arith.subf %6, %7 : vector<16x256xf32>
    %9 = arith.mulf %8, %8 : vector<16x256xf32>
    %10 = vector.extract_strided_slice %1 {offsets = [1, 0], sizes = [1, 256], strides = [1, 1]} : vector<2x256xf32> to vector<1x256xf32>
    %11 = vector.extract_strided_slice %3 {offsets = [0, 1], sizes = [16, 1], strides = [1, 1]} : vector<16x2xf32> to vector<16x1xf32>
    %12 = vector.broadcast %10 : vector<1x256xf32> to vector<16x256xf32>
    %13 = vector.broadcast %11 : vector<16x1xf32> to vector<16x256xf32>
    %14 = arith.subf %12, %13 : vector<16x256xf32>
    %15 = arith.mulf %14, %14 : vector<16x256xf32>
    %16 = arith.addf %9, %15 : vector<16x256xf32>
    %c0_5 = arith.constant 0 : index
    %c0_6 = arith.constant 0 : index
    %c0_7 = arith.constant 0 : index
    %17 = vector.load %arg5[%c0_5, %c0_6, %c0_7] : memref<1x16x1xf32, #tpu.memory_space<vmem>>, vector<1x16x1xf32>
    %18 = vector.shape_cast %17 : vector<1x16x1xf32> to vector<16x1xf32>
    %19 = vector.broadcast %18 : vector<16x1xf32> to vector<16x256xf32>
    %20 = arith.mulf %16, %19 : vector<16x256xf32>
    %21 = math.exp %20 : vector<16x256xf32>
    %c0_8 = arith.constant 0 : index
    %c0_9 = arith.constant 0 : index
    %c0_10 = arith.constant 0 : index
    %22 = vector.load %arg6[%c0_8, %c0_9, %c0_10] : memref<1x16x256xf32, #tpu.memory_space<vmem>>, vector<1x16x256xf32>
    %23 = vector.shape_cast %22 : vector<1x16x256xf32> to vector<16x256xf32>
    %24 = vector.shape_cast %21 : vector<16x256xf32> to vector<1x16x256xf32>
    tpu.vector_store %arg6[%c0_8, %c0_9, %c0_10], %24 {strides = array<i32>} : memref<1x16x256xf32, #tpu.memory_space<vmem>>, vector<1x16x256xf32>,
    return
  }
  func.func @transform_0(%arg0: i32, %arg1: i32, %arg2: i32) -> (i32, i32, i32) {
    %c0_i32 = arith.constant 0 : i32
    %c0_i32_0 = arith.constant 0 : i32
    %c0_i32_1 = arith.constant 0 : i32
    return %c0_i32, %c0_i32_0, %arg2 : i32, i32, i32
  }
  func.func @transform_1(%arg0: i32, %arg1: i32, %arg2: i32) -> (i32, i32, i32) {
    %c0_i32 = arith.constant 0 : i32
    %c0_i32_0 = arith.constant 0 : i32
    return %arg1, %arg0, %c0_i32 : i32, i32, i32
  }
  func.func @transform_2(%arg0: i32, %arg1: i32, %arg2: i32) -> (i32, i32, i32) {
    %c0_i32 = arith.constant 0 : i32
    %c0_i32_0 = arith.constant 0 : i32
    return %arg1, %arg0, %c0_i32 : i32, i32, i32
  }
  func.func @transform_3(%arg0: i32, %arg1: i32, %arg2: i32) -> (i32, i32, i32) {
    %c0_i32 = arith.constant 0 : i32
    return %arg1, %arg0, %arg2 : i32, i32, i32
  }
}

</mosaic_0001>

<bundles_post_ra>
// kernel: tpu_custom_call.1
= control target key start
LH: loop header
LB: loop body
LE: loop exit
PB: predicated region body
PF: predicated region fallthrough
CT: control target
= control target key end

     0   :  { %8 = vsyncpa [#allocation3], 0  ;;  %s825_s0 = inlined_call_operand.vmem [shape: f32[1,2,256], index: 0, kind: input, shape index: {}]   ;;  %s826_s1 = inlined_call_operand.vmem [shape: f32[2,16,2], index: 1, kind: input, shape index: {}]   ;;  %s827_s2 = inlined_call_operand.vmem [shape: f32[2,16,1], index: 2, kind: input, shape index: {}]   ;;  %s828_s3 = inlined_call_operand.hbm [shape: f32[2,16,256], index: 3, kind: output, shape index: {}]  }
   0x1   :  { %10 = vsyncpa [#allocation3 + $0x1], 0  ;;  %s704_s12 = smov 0   ;;  %s706_s13 = smov 0  }
   0x2   :  { %s708_s14 = smov 0   ;;  %s710_s15 = smov 0  }
   0x3   :  { %s712_s16 = smov 0   ;;  %s714_s17 = smov 0  }
   0x4 LB: > { %s510_s18 = sadd.s32 4294967295, %s677_s17   ;;  %s511_s19 = sadd.s32 4294967294, %s677_s17   ;;  %s677_s17 = sphi %s714_s17, %s16_s17   ;;  %s673_s16 = sphi %s712_s16, %s835_s16   ;;  %s669_s15 = sphi %s710_s15, %s834_s15   ;;  %s665_s14 = sphi %s708_s14, %s833_s14   ;;  %s661_s13 = sphi %s706_s13, %s832_s13   ;;  %s657_s12 = sphi %s704_s12, %s831_s12  }
   0x5   : > { %s31_s20 = sadd.s32 1, %s673_s16  ;;  %s128_s21 = sadd.s32 1, %s665_s14 }
   0x6   : > { %p33_p0 = scmp.ge.s32.totalorder %s31_s20, 2  ;;  %p138_p1 = scmp.ne.s32.totalorder %s665_s14, %s661_s13 }
   0x7   : > { %p139_p2 = scmp.eq.s32.totalorder %s510_s18, 1  ;;  %p144_p3 = scmp.ne.s32.totalorder %s661_s13, %s657_s12 }
   0x8   : > { %s837_s20 = smov (%p33_p0, %s31_s20), 0  ;;  %p145_p5 = scmp.eq.s32.totalorder %s511_s19, 1 }
   0x9   : > { %p744_p4 = por %p139_p2, %p138_p1  ;;  %s121_s23 = ssub.s32 %s673_s16, %s837_s20 }
   0xa   : > { %p515_p6 = scmp.ge.s32.totalorder %s677_s17, 1  ;;  %p126_p7 = scmp.eq.s32.totalorder %s121_s23, 0 }
   0xb   : > { %p751_p8 = por %p145_p5, %p144_p3  ;;  %p198_p9 = scmp.lt.s32.totalorder %s677_s17, 3 }
   0xc   : > { %s757_s25 = scalar_select %p126_p7, %s665_s14, %s128_s21  }
   0xd   : > { %p199_p10 = pnand %p515_p6, %p198_p9 }
   0xe   : > { %p247_p11 = scmp.lt.s32.totalorder (!%p199_p10), %s669_s15, 1  ;;  %v679_v0 = vmov (!%p199_p10), 1   ;;  %v680_v1 = vmov (!%p199_p10), 0   ;;  %v272_v6 = vlaneseq (!%p199_p10)  ;;  %v268_v12 = vld [vmem:[%s825_s0] sm:$0xf] (!%p199_p10)  ;;  %s237_s9 = sand.u32 (!%p199_p10), 1, %s661_s13  }
   0xf   : > { %202 = sbr.rel (%p199_p10) target bundleno = 196 (0xc4), region = 32  ;;  %589 = vset.pattern.permute.xlu1 (!%p199_p10), %v679_v0  ;;  %588 = vset.pattern.permute.xlu0 (!%p199_p10), %v680_v1  ;;  %s516_s10 = sshll.u32 (!%p199_p10), %s237_s9, 5 }
  0x10   : > { %v273_v7 = vshrl.u32 (!%p199_p10), %v272_v6, 7  ;;  %s528_s11 = sshll.u32 (!%p199_p10), %s669_s15, 9  ;;  %s239_s18 = scalar_lea.vmem (!%p199_p10), [#allocation2], %s516_s10 }
  0x11   : > { %s393_s19 = sshll.u32 (!%p199_p10), %s239_s18, 4  ;;  %s681_s28 = smov (!%p199_p10), [#allocation2]   ;;  %s777_s19 = int_to_ptr.vmem [resolvable:$true] %s393_s19 }
  0x12   : > { %v310_v8 = vsub.s32 (!%p199_p10), 1, %v273_v7  ;;  %v314_v9 = vsub.s32 (!%p199_p10), 3, %v273_v7  ;;  %v274_v10 = vsub.s32 (!%p199_p10), 0, %v273_v7  ;;  %v278_v11 = vsub.s32 (!%p199_p10), 2, %v273_v7  ;;  %s603_s29 = sshll.u32 (!%p199_p10), %s681_s28, 4  ;;  %s604_s29 = int_to_ptr.vmem [resolvable:$false] %s603_s29 }
  0x13   : > { %p606_p1 = scmp.lt.s32.totalorder (!%p199_p10), %s777_s19, %s604_s29 }
  0x14   : > { %v311_v13 = vrot.slane (!%p199_p10), %v268_v12, %v310_v8  ;;  %v315_v14 = vrot.slane (!%p199_p10), %v268_v12, %v314_v9  ;;  %v275_v15 = vrot.slane (!%p199_p10), %v268_v12, %v274_v10  ;;  %v279_v16 = vrot.slane (!%p199_p10), %v268_v12, %v278_v11 }
  0x16   : > { %s248_s26 = scalar_select %p247_p11, %s669_s15, 1  ;;  %v321_v17 = vrot.slane %v311_v13, %v310_v8  ;;  %v325_v18 = vrot.slane %v315_v14, %v310_v8  ;;  %v285_v19 = vrot.slane %v275_v15, %v274_v10  ;;  %v289_v20 = vrot.slane %v279_v16, %v274_v10 }
  0x17   : > { %s779_s15 = scalar_lea.sflag [#allocation3], %s237_s9 }
  0x18   : > { %s526_s27 = sshll.u32 %s248_s26, 4  ;;  %s775_s26 = scalar_lea.hbm %s828_s3, %s528_s11 }
  0x19   : > { %s254_s30 = scalar_lea.vmem %s826_s1, %s526_s27  ;;  %s264_s6 = scalar_lea.vmem %s827_s2, %s526_s27 }
  0x1a   : > { %v269_v2 = vld [vmem:[%s254_s30] sm:$0xff]  ;;  %v270_v3 = vld [vmem:[%s254_s30 + $0x8] sm:$0xff]  ;;  %s599_s27 = scalar_lea.vmem %s777_s19, 512  ;;  %s605_s30 = scalar_lea.vmem %s604_s29, 1024 }
  0x1b   : > { %327 = vperm.xlu1 %589, %v269_v2   ;;  %292 = vperm.xlu0 %588, %v269_v2   ;;  %v346_v4 = vld [vmem:[%s264_s6] sm:$0xff]  ;;  %v347_v5 = vld [vmem:[%s264_s6 + $0x8] sm:$0xff]  ;;  %p600_p12 = scmp.ne.s32.totalorder %s777_s19, %s599_s27  ;;  %p607_p2 = scmp.lt.s32.totalorder %s605_s30, %s599_s27 }
  0x1d   : > { %p601_p13 = pnand %p600_p12, %p744_p4  ;;  %p608_p3 = por %p607_p2, %p606_p1 }
  0x1f   : > { %331 = vperm.xlu1 %589, %v270_v3   ;;  %297 = vperm.xlu0 %588, %v270_v3   ;;  %p602_p0 = pneg %p601_p13 }
  0x21   : > { %p609_p5 = pnand %p608_p3, %p602_p0 }
  0x23   : > { %350 = vperm.xlu0 %588, %v346_v4   ;;  %590 = vset.pattern.permute.xlu1 %v680_v1 }
  0x24   : > { %355 = vperm.xlu1 %590, %v347_v5  }
  0x9a   : > { %v328_v21 = vpop.permute.xlu1 %327  ;;  %v293_v22 = vpop.permute.xlu0 %292 }
  0x9b   : > { %v334_v23 = vsub.f32 %v321_v17, %v328_v21  ;;  %v335_v24 = vsub.f32 %v325_v18, %v328_v21  ;;  %v300_v25 = vsub.f32 %v285_v19, %v293_v22  ;;  %v301_v26 = vsub.f32 %v289_v20, %v293_v22 }
  0x9d   : > { %v338_v27 = vmul.f32 %v334_v23, %v334_v23  ;;  %v339_v28 = vmul.f32 %v335_v24, %v335_v24  ;;  %v304_v29 = vmul.f32 %v300_v25, %v300_v25  ;;  %v305_v30 = vmul.f32 %v301_v26, %v301_v26 }
  0x9e   : > { %v332_v31 = vpop.permute.xlu1 %331  ;;  %v298_v32 = vpop.permute.xlu0 %297 }
  0x9f   : > { %v336_v33 = vsub.f32 %v321_v17, %v332_v31  ;;  %v337_v34 = vsub.f32 %v325_v18, %v332_v31  ;;  %v302_v35 = vsub.f32 %v285_v19, %v298_v32  ;;  %v303_v36 = vsub.f32 %v289_v20, %v298_v32 }
  0xa0   : > { %v342_v37 = vadd.f32 %v338_v27, %v304_v29  ;;  %v343_v38 = vadd.f32 %v339_v28, %v305_v30 }
  0xa1   : > { %v340_v39 = vmul.f32 %v336_v33, %v336_v33  ;;  %v341_v40 = vmul.f32 %v337_v34, %v337_v34  ;;  %v306_v41 = vmul.f32 %v302_v35, %v302_v35  ;;  %v307_v42 = vmul.f32 %v303_v36, %v303_v36 }
  0xa2   : > { %v351_v43 = vpop.permute.xlu0 %350 }
  0xa3   : > { %v358_v44 = vmul.f32 %v351_v43, %v342_v37  ;;  %v359_v45 = vmul.f32 %v351_v43, %v343_v38  ;;  %v356_v46 = vpop.permute.xlu1 %355  ;;  %v344_v47 = vadd.f32 %v340_v39, %v306_v41  ;;  %v345_v48 = vadd.f32 %v341_v40, %v307_v42 }
  0xa5   : > { %v362_v49 = vmul.f32 1.442695, %v358_v44  ;;  %v364_v50 = vmul.f32 1.442695, %v359_v45  ;;  %v360_v51 = vmul.f32 %v356_v46, %v344_v47  ;;  %v361_v52 = vmul.f32 %v356_v46, %v345_v48 }
  0xa7   : > { %591 = vpow2.f32 %v362_v49  ;;  %v366_v53 = vmul.f32 1.442695, %v360_v51  ;;  %v368_v54 = vmul.f32 1.442695, %v361_v52 }
  0xa8   : > { %593 = vpow2.f32 %v364_v50 }
  0xa9   : > { %595 = vpow2.f32 %v366_v53 }
  0xaa   : > { %597 = vpow2.f32 %v368_v54 }
  0xb1   : > { %v592_v55 = vpop.eup %591 }
  0xb2   : > { %v594_v56 = vpop.eup %593  ;;  %370 = vst [vmem:[%s239_s18] sm:$0xff] %v592_v55 }
  0xb3   : > { %v596_v57 = vpop.eup %595  ;;  %371 = vst [vmem:[%s239_s18 + $0x8] sm:$0xff] %v594_v56 }
  0xb4   : > { %v598_v58 = vpop.eup %597  ;;  %372 = vst [vmem:[%s239_s18 + $0x10] sm:$0xff] %v596_v57 }
  0xb5   : > { %373 = vst [vmem:[%s239_s18 + $0x18] sm:$0xff] %v598_v58 }
  0xb6   : > { %612 = shalt.err (!%p609_p5)
}
  0xb7   : > { %s613_s4 = scalar_lea.hbm %s775_s26, 512  ;;  %s617_s7 = scalar_lea.hbm %s828_s3, 1024 }
  0xb8   : > { %p614_p6 = scmp.ne.s32.totalorder %s775_s26, %s613_s4  ;;  %p618_p10 = scmp.lt.u32.totalorder %s775_s26, %s828_s3 }
  0xb9   : > { %p619_p11 = scmp.lt.u32.totalorder %s617_s7, %s613_s4  ;;  %p621_p13 = scmp.lt.u32.totalorder %s613_s4, %s775_s26 }
  0xba   : > { %p615_p7 = pnand %p614_p6, %p744_p4 }
  0xbb   : > { %p620_p12 = por %p619_p11, %p618_p10 }
  0xbc   : > { %p616_p9 = pneg %p615_p7 }
  0xbd   : > { %p622_p0 = por %p621_p13, %p620_p12 }
  0xbf   : > { %p623_p1 = pnand %p622_p0, %p616_p9 }
  0xc1   : > { %626 = shalt.err (!%p623_p1)
}
  0xc2   : > { %s682_s10 = smov 256   ;;  %s683_s11 = smov 16  }
  0xc3   : > { %529 = dma.vmem_to_hbm [thread:$0]  (%p744_p4), %s777_s19, 512, %s775_s26, %s779_s15, %s682_s10, %s682_s10, %s683_s11  }
  0xc4 PF: > { %p535_p2 = scmp.ge.s32.totalorder %s677_s17, 2  ;;  %s408_s18 = sand.u32 1, %s657_s12  }
  0xc5   : > { %s409_s21 = scalar_lea.sflag [#allocation3], %s408_s18 }
  0xc6   : > { %p532_p3 = pnand %p535_p2, %p751_p8 }
  0xc8   : > { %652 = dma.done.wait (!%p532_p3), %s409_s21, 512  }
  0xc9   : > { %654 = vsyncadd (!%p532_p3), %s409_s21, 4294966784  ;;  %s16_s17 = sadd.s32 1, %s677_s17   ;;  %s831_s12 = smov %s661_s13 }
  0xca   : > { %p13_p5 = scmp.ge.s32.totalorder %s16_s17, 4   ;;  %s832_s13 = smov %s665_s14 }
  0xcb   : > { %s833_s14 = smov %s757_s25  ;;  %s834_s15 = smov %s673_s16 }
  0xcc   : > { %s835_s16 = smov %s837_s20  ;;  %15 = sbr.rel (!%p13_p5) target bundleno = 4 (0x4), region = 73 }
  0xd3   :  { %414 = vsyncpa [#allocation3], 1 }
  0xd4   :  { %416 = vsyncpa [#allocation3 + $0x1], 1 }

</bundles_post_ra>
